<compile_context>
chip_gen: v5e
topology: v5e:2x2
jax: 0.10.0
libtpu: 0.0.40
codegen_flags: <defaults>
</compile_context>

<pallas_src>
import functools

import jax
import jax.numpy as jnp
import numpy as np
from jax import lax
from jax.experimental import pallas as pl
from jax.experimental.pallas import tpu as pltpu


# ----------------------------- Pallas kernels ------------------------------

def _gemm_bias_act_kernel(p_ref, w_ref, b_ref, o_ref, *, apply_relu):
    """o = [relu](p @ w + b); p/w are bf16, accumulate & post-ops in f32."""
    y = jnp.dot(p_ref[...], w_ref[...], preferred_element_type=jnp.float32)
    y = y + b_ref[...]
    if apply_relu:
        y = jnp.maximum(y, 0.0)
    o_ref[...] = y


def _max4_kernel(a_ref, b_ref, c_ref, d_ref, o_ref):
    """Elementwise max of four equally-shaped slabs (2x2 max-pool)."""
    o_ref[...] = jnp.maximum(jnp.maximum(a_ref[...], b_ref[...]),
                             jnp.maximum(c_ref[...], d_ref[...]))


def _mlp_softmax_kernel(x_ref, w1_ref, b1_ref, w2_ref, b2_ref,
                        w3_ref, b3_ref, o_ref):
    """Fused fc1+relu -> fc2+relu -> fc3 -> softmax, all resident in VMEM."""
    h = jnp.dot(x_ref[...], w1_ref[...], preferred_element_type=jnp.float32)
    h = jnp.maximum(h + b1_ref[...], 0.0)
    h = jnp.dot(h.astype(jnp.bfloat16), w2_ref[...],
                preferred_element_type=jnp.float32)
    h = jnp.maximum(h + b2_ref[...], 0.0)
    logits = jnp.dot(h.astype(jnp.bfloat16), w3_ref[...],
                     preferred_element_type=jnp.float32) + b3_ref[...]
    m = jnp.max(logits, axis=-1, keepdims=True)
    e = jnp.exp(logits - m)
    s = jnp.sum(e, axis=-1, keepdims=True)
    # Exact f32 normalization: row sums must be 1 (approx reciprocal drifted
    # to ~1.0017 and failed the correctness check).
    o_ref[...] = e / s


# ------------------------------ call wrappers -------------------------------

def _pick_row_tile(p, max_tile=512):
    """Largest divisor of p that is <= max_tile and a multiple of 8 (sublane);
    falls back to the full extent (always a legal block shape)."""
    if p <= max_tile:
        return p
    for t in range(max_tile - max_tile % 8, 7, -8):
        if p % t == 0:
            return t
    return p


def matmul_bias_act(patches, w_mat, bias, *, relu, max_row_tile=512):
    """(P,K) @ (K,C) + b [relu].  P-tiled grid, weights resident in VMEM."""
    P, K = patches.shape
    C = w_mat.shape[1]
    tp = _pick_row_tile(P, max_row_tile)
    grid = (P // tp,)
    kern = functools.partial(_gemm_bias_act_kernel, apply_relu=relu)
    flops = 2 * P * K * C
    bytes_accessed = P * K * 2 + K * C * 2 + C * 4 + P * C * 4
    return pl.pallas_call(
        kern,
        out_shape=jax.ShapeDtypeStruct((P, C), jnp.float32),
        grid=grid,
        in_specs=[
            pl.BlockSpec((tp, K), lambda i: (i, 0)),   # streamed over P
            pl.BlockSpec((K, C), lambda i: (0, 0)),    # resident weights
            pl.BlockSpec((1, C), lambda i: (0, 0)),    # resident bias
        ],
        out_specs=pl.BlockSpec((tp, C), lambda i: (i, 0)),
        compiler_params=pltpu.CompilerParams(
            dimension_semantics=("parallel",)),        # megacore-shardable
        cost_estimate=pl.CostEstimate(
            flops=int(flops), transcendentals=0,
            bytes_accessed=int(bytes_accessed)),
    )(patches.astype(jnp.bfloat16), w_mat.astype(jnp.bfloat16),
      bias.reshape(1, C).astype(jnp.float32))


def max_pool_2x2(x_nhwc):
    """2x2/stride-2 max-pool via a max-of-4 kernel on lane-dense slabs."""
    N, H, W, C = x_nhwc.shape
    Ho, Wo = H // 2, W // 2
    # Four shifted views of every 2x2 window, flattened to (N*Ho, Wo*C) so the
    # lane axis is dense (84 / 80 lanes instead of 6 / 16). Slicing is glue.
    slabs = [x_nhwc[:, dy::2, dx::2, :].reshape(N * Ho, Wo * C)
             for dy in (0, 1) for dx in (0, 1)]
    M, L = N * Ho, Wo * C
    spec = pl.BlockSpec((M, L), lambda i: (0, 0))      # tiny: one VMEM block
    out = pl.pallas_call(
        _max4_kernel,
        out_shape=jax.ShapeDtypeStruct((M, L), jnp.float32),
        grid=(1,),
        in_specs=[spec] * 4,
        out_specs=spec,
        cost_estimate=pl.CostEstimate(
            flops=3 * M * L, transcendentals=0, bytes_accessed=5 * M * L * 4),
    )(*slabs)
    return out.reshape(N, Ho, Wo, C)


def mlp_softmax(x, w1, b1, w2, b2, w3, b3):
    """Fused fc1/fc2/fc3 + softmax — everything fits in VMEM at these sizes."""
    N, D = x.shape
    C_out = w3.shape[1]

    def fs(shape):
        return pl.BlockSpec(shape, lambda i: (0,) * len(shape))

    flops = 2 * N * (w1.shape[0] * w1.shape[1]
                     + w2.shape[0] * w2.shape[1]
                     + w3.shape[0] * w3.shape[1])
    bytes_accessed = ((x.size + w1.size + w2.size + w3.size) * 2
                      + (b1.size + b2.size + b3.size + N * C_out) * 4)
    return pl.pallas_call(
        _mlp_softmax_kernel,
        out_shape=jax.ShapeDtypeStruct((N, C_out), jnp.float32),
        grid=(1,),
        in_specs=[fs((N, D)),
                  fs(w1.shape), fs((1, w1.shape[1])),
                  fs(w2.shape), fs((1, w2.shape[1])),
                  fs(w3.shape), fs((1, w3.shape[1]))],
        out_specs=fs((N, C_out)),
        cost_estimate=pl.CostEstimate(
            flops=int(flops), transcendentals=N * C_out,
            bytes_accessed=int(bytes_accessed)),
    )(x.astype(jnp.bfloat16),
      w1.astype(jnp.bfloat16), b1.reshape(1, -1).astype(jnp.float32),
      w2.astype(jnp.bfloat16), b2.reshape(1, -1).astype(jnp.float32),
      w3.astype(jnp.bfloat16), b3.reshape(1, -1).astype(jnp.float32))


# ------------------------------- glue (JAX) ---------------------------------

def _im2col(x_nhwc, kh, kw, stride, padding):
    """Extract conv patches -> (N*Ho*Wo, kh*kw*C), channel fastest per tap."""
    N, H, W, C = x_nhwc.shape
    xp = jnp.pad(x_nhwc, ((0, 0), (padding, padding),
                          (padding, padding), (0, 0)))
    Ho = (H + 2 * padding - kh) // stride + 1
    Wo = (W + 2 * padding - kw) // stride + 1
    cols = []
    for dy in range(kh):
        for dx in range(kw):
            cols.append(xp[:, dy:dy + stride * (Ho - 1) + 1:stride,
                              dx:dx + stride * (Wo - 1) + 1:stride, :])
    patches = jnp.concatenate(cols, axis=-1)            # (N, Ho, Wo, kh*kw*C)
    return patches.reshape(N * Ho * Wo, kh * kw * C), Ho, Wo


def _w_to_mat(w_oihw):
    """PyTorch (Cout, Cin, kh, kw) -> (kh*kw*Cin, Cout) matching im2col order."""
    Cout, Cin, kh, kw = w_oihw.shape
    return jnp.transpose(w_oihw, (2, 3, 1, 0)).reshape(kh * kw * Cin, Cout)


def lenet_forward(x_nchw, params):
    x = jnp.transpose(x_nchw, (0, 2, 3, 1)).astype(jnp.float32)   # NHWC
    N = x.shape[0]

    # conv1 (1->6, 5x5, pad 2) + relu
    p1, H1, W1 = _im2col(x, 5, 5, 1, 2)
    y1 = matmul_bias_act(p1, _w_to_mat(params["conv1_w"]),
                         params["conv1_b"], relu=True)
    y1 = y1.reshape(N, H1, W1, 6)

    # maxpool 2x2
    y1 = max_pool_2x2(y1)

    # conv2 (6->16, 5x5, valid) + relu
    p2, H2, W2 = _im2col(y1, 5, 5, 1, 0)
    y2 = matmul_bias_act(p2, _w_to_mat(params["conv2_w"]),
                         params["conv2_b"], relu=True)
    y2 = y2.reshape(N, H2, W2, 16)

    # maxpool 2x2
    y2 = max_pool_2x2(y2)

    # flatten in PyTorch's NCHW order (out.view(N, -1))
    flat = jnp.transpose(y2, (0, 3, 1, 2)).reshape(N, -1)

    # fc1+relu -> fc2+relu -> fc3 -> softmax (single fused kernel)
    return mlp_softmax(flat,
                       params["fc1_w"], params["fc1_b"],
                       params["fc2_w"], params["fc2_b"],
                       params["fc3_w"], params["fc3_b"])


# --------------------------- pure-JAX reference ------------------------------

def ref_forward(x, params):
    def conv(z, w, b, pad):
        y = lax.conv_general_dilated(
            z, w, (1, 1), ((pad, pad), (pad, pad)),
            dimension_numbers=("NCHW", "OIHW", "NCHW"))
        return y + b.reshape(1, -1, 1, 1)

    def pool(z):
        return lax.reduce_window(z, -jnp.inf, lax.max,
                                 (1, 1, 2, 2), (1, 1, 2, 2), "VALID")

    out = jax.nn.relu(conv(x, params["conv1_w"], params["conv1_b"], 2))
    out = pool(out)
    out = jax.nn.relu(conv(out, params["conv2_w"], params["conv2_b"], 0))
    out = pool(out)
    out = out.reshape(out.shape[0], -1)
    out = jax.nn.relu(out @ params["fc1_w"] + params["fc1_b"])
    out = jax.nn.relu(out @ params["fc2_w"] + params["fc2_b"])
    out = out @ params["fc3_w"] + params["fc3_b"]
    return jax.nn.softmax(out, axis=1)


# ---------------------------------- main -------------------------------------

if __name__ == "__main__":
    N = 2                       # LeNet expects 1x28x28 inputs (fc1 = 16*5*5)
    key = jax.random.PRNGKey(0)
    ks = jax.random.split(key, 11)

    def uinit(k, shape, fan_in):
        bound = 1.0 / np.sqrt(fan_in)
        return jax.random.uniform(k, shape, jnp.float32, -bound, bound)

    params = {
        "conv1_w": uinit(ks[0], (6, 1, 5, 5), 25),
        "conv1_b": uinit(ks[1], (6,), 25),
        "conv2_w": uinit(ks[2], (16, 6, 5, 5), 150),
        "conv2_b": uinit(ks[3], (16,), 150),
        "fc1_w":   uinit(ks[4], (400, 120), 400),   # stored (in, out)
        "fc1_b":   uinit(ks[5], (120,), 400),
        "fc2_w":   uinit(ks[6], (120, 84), 120),
        "fc2_b":   uinit(ks[7], (84,), 120),
        "fc3_w":   uinit(ks[8], (84, 10), 84),
        "fc3_b":   uinit(ks[9], (10,), 84),
    }
    x = jax.random.normal(ks[10], (N, 1, 28, 28), jnp.float32)

    out = jax.block_until_ready(lenet_forward(x, params))
    ref = jax.block_until_ready(ref_forward(x, params))

    assert out.shape == (N, 10), out.shape
    np.testing.assert_allclose(np.asarray(out), np.asarray(ref),
                               rtol=2e-2, atol=2e-2)
    np.testing.assert_allclose(np.asarray(out).sum(axis=1), 1.0, atol=1e-3)
    print("KERNEL_OK")
</pallas_src>

<mosaic_0001>
module attributes {stable_mosaic.version = 11 : i64} {
  func.func @_gemm_bias_act_kernel(%arg0: i32, %arg1: memref<392x25xbf16, #tpu.memory_space<vmem>>, %arg2: memref<25x6xbf16, #tpu.memory_space<vmem>>, %arg3: memref<1x6xf32, #tpu.memory_space<vmem>>, %arg4: memref<392x6xf32, #tpu.memory_space<vmem>>) attributes {dimension_semantics = [#tpu.dimension_semantics<parallel>], iteration_bounds = array<i64: 4>, scalar_prefetch = 0 : i64, scratch_operands = 0 : i64, tpu.core_type = #tpu.core_type<tc>, window_params = [{transform_indices = @transform_0, window_bounds = array<i64: 392, 25>}, {pipeline_mode = #tpu.pipeline_mode<synchronous>, transform_indices = @transform_1, window_bounds = array<i64: 25, 6>}, {pipeline_mode = #tpu.pipeline_mode<synchronous>, transform_indices = @transform_2, window_bounds = array<i64: 1, 6>}, {transform_indices = @transform_3, window_bounds = array<i64: 392, 6>}]} {
    %c0 = arith.constant 0 : index
    %c0_0 = arith.constant 0 : index
    %0 = vector.load %arg1[%c0, %c0_0] : memref<392x25xbf16, #tpu.memory_space<vmem>>, vector<392x25xbf16>
    %c0_1 = arith.constant 0 : index
    %c0_2 = arith.constant 0 : index
    %1 = vector.load %arg2[%c0_1, %c0_2] : memref<25x6xbf16, #tpu.memory_space<vmem>>, vector<25x6xbf16>
    %cst = arith.constant dense<0.000000e+00> : vector<392x6xf32>
    %2 = tpu.matmul %0, %1, %cst {dimension_numbers = #tpu.dot_dimension_numbers<[1], [0], [0], [1], [0, 0, 1, 1], [], []>} : vector<392x25xbf16>, vector<25x6xbf16>, vector<392x6xf32> -> vector<392x6xf32>
    %c0_3 = arith.constant 0 : index
    %c0_4 = arith.constant 0 : index
    %3 = vector.load %arg3[%c0_3, %c0_4] : memref<1x6xf32, #tpu.memory_space<vmem>>, vector<1x6xf32>
    %4 = vector.broadcast %3 : vector<1x6xf32> to vector<392x6xf32>
    %5 = arith.addf %2, %4 : vector<392x6xf32>
    %cst_5 = arith.constant 0.000000e+00 : f32
    %6 = vector.broadcast %cst_5 : f32 to vector<392x6xf32>
    %7 = arith.maximumf %5, %6 : vector<392x6xf32>
    %c0_6 = arith.constant 0 : index
    %c0_7 = arith.constant 0 : index
    %8 = vector.load %arg4[%c0_6, %c0_7] : memref<392x6xf32, #tpu.memory_space<vmem>>, vector<392x6xf32>
    tpu.vector_store %arg4[%c0_6, %c0_7], %7 {strides = array<i32>} : memref<392x6xf32, #tpu.memory_space<vmem>>, vector<392x6xf32>,
    return
  }
  func.func @transform_0(%arg0: i32) -> (i32, i32) {
    %c0_i32 = arith.constant 0 : i32
    %c0_i32_0 = arith.constant 0 : i32
    return %arg0, %c0_i32 : i32, i32
  }
  func.func @transform_1(%arg0: i32) -> (i32, i32) {
    %c0_i32 = arith.constant 0 : i32
    %c0_i32_0 = arith.constant 0 : i32
    %c0_i32_1 = arith.constant 0 : i32
    return %c0_i32, %c0_i32_0 : i32, i32
  }
  func.func @transform_2(%arg0: i32) -> (i32, i32) {
    %c0_i32 = arith.constant 0 : i32
    %c0_i32_0 = arith.constant 0 : i32
    %c0_i32_1 = arith.constant 0 : i32
    return %c0_i32, %c0_i32_0 : i32, i32
  }
  func.func @transform_3(%arg0: i32) -> (i32, i32) {
    %c0_i32 = arith.constant 0 : i32
    %c0_i32_0 = arith.constant 0 : i32
    return %arg0, %c0_i32 : i32, i32
  }
}

</mosaic_0001>

<bundles_post_ra>
// kernel: tpu_custom_call.1
= control target key start
LH: loop header
LB: loop body
LE: loop exit
PB: predicated region body
PF: predicated region fallthrough
CT: control target
= control target key end

     0   :  { %s946_s12 = smov 0   ;;  %s1182_s0 = inlined_call_operand.vmem [shape: bf16[1568,25], index: 0, kind: input, shape index: {}]   ;;  %s1183_s1 = inlined_call_operand.vmem [shape: bf16[25,6], index: 1, kind: input, shape index: {}]   ;;  %s1184_s2 = inlined_call_operand.vmem [shape: f32[1,6], index: 2, kind: input, shape index: {}]   ;;  %s1185_s3 = inlined_call_operand.vmem [shape: f32[1568,6], index: 3, kind: output, shape index: {}]  }
   0x1 LB: > { %s737_s13 = sadd.s32 4294967295, %s923_s12   ;;  %p741_p0 = scmp.ge.s32.totalorder %s923_s12, 1  ;;  %s923_s12 = sphi %s946_s12, %s13_s12  }
   0x2   : > { %p138_p1 = scmp.lt.s32.totalorder %s923_s12, 5 }
   0x4   : > { %p139_p2 = pnand %p741_p0, %p138_p1 }
   0x5   : > { %s162_s18 = smul.u32 (!%p139_p2), 49, %s737_s13 }
   0x6   : > { %142 = sbr.rel (%p139_p2) target bundleno = 265 (0x109), region = 32 }
   0x7   : > { %p163_p3 = scmp.lt.s32.totalorder (!%p139_p2), %s162_s18, 195 }
   0xb   : > { %v846_v0 = vld [vmem:[%s1183_s1 + $0x8] sm:$0xf]  ;;  %v900_v1 = vld [vmem:[%s1183_s1 + $0x8] sm:$0x10]  ;;  %vm442_vm0 = vcmask 1043456   ;;  %vm443_vm1 = vcmask 1044480  }
   0xc   : > { %v847_v2 = vor.u32 %v900_v1, %v846_v0  ;;  %v925_v3 = vmov 65535   ;;  %s1187_s18 = smov (!%p163_p3, %s162_s18), 195  ;;  %v899_v7 = vld [vmem:[%s1183_s1] sm:$0xff]  ;;  %vm366_vm2 = vcmask 203776   ;;  %vm631_vm3 = vcmask 48128  }
   0xd   : > { %v444_v4 = vsel %vm442_vm0, 4294967295, %v925_v3  ;;  %s742_s21 = sshll.u32 %s1187_s18, 2  ;;  %v1024_v35 = vld [vmem:[%s1184_s2] ss:$0 sm:$0xff]  ;;  %s743_s27 = sshll.u32 %s1187_s18, 3 }
   0xe   : > { %v445_v5 = vsel %vm443_vm1, %v444_v4, 0  ;;  %s969_s24 = scalar_lea.vmem %s1182_s0, %s742_s21  ;;  %s1031_s30 = scalar_lea.vmem %s1185_s3, %s743_s27 }
   0xf   : > { %v447_v6 = vand.u32 %v847_v2, %v445_v5  ;;  %v881_v8 = vld [vmem:[%s969_s24 + $0x30] sm:$0xff]  ;;  %v888_v9 = vld [vmem:[%s969_s24 + $0x68] sm:$0xff]  ;;  %v875_v10 = vld [vmem:[%s969_s24] sm:$0xff] }
  0x10   : > { %v895_v11 = vld [vmem:[%s969_s24 + $0xa0] sm:$0xff]  ;;  %v882_v12 = vld [vmem:[%s969_s24 + $0x38] sm:$0xff]  ;;  %v889_v13 = vld [vmem:[%s969_s24 + $0x70] sm:$0xff] }
  0x11   : > { %901 = vmatpush.bf16.msra.mxu1 %v447_v6  ;;  %902 = vmatpush.bf16.msra.mxu2 %v447_v6  ;;  %v876_v14 = vld [vmem:[%s969_s24 + $0x8] sm:$0xff]  ;;  %v883_v16 = vld [vmem:[%s969_s24 + $0x40] sm:$0xff]  ;;  %v890_v17 = vld [vmem:[%s969_s24 + $0x78] sm:$0xff] }
  0x12   : > { %455 = vmatpush.bf16.msra.mxu0 %v447_v6  ;;  %903 = vmatpush.bf16.msra.mxu3 %v447_v6  ;;  %v896_v15 = vld [vmem:[%s969_s24 + $0xa8] sm:$0xff]  ;;  %v877_v18 = vld [vmem:[%s969_s24 + $0x10] sm:$0xff]  ;;  %v891_v21 = vld [vmem:[%s969_s24 + $0x80] sm:$0xff] }
  0x13   : > { %v897_v19 = vld [vmem:[%s969_s24 + $0xb0] sm:$0xff]  ;;  %v884_v20 = vld [vmem:[%s969_s24 + $0x48] sm:$0xff]  ;;  %v878_v22 = vld [vmem:[%s969_s24 + $0x18] sm:$0xff] }
  0x14   : > { %v898_v23 = vld [vmem:[%s969_s24 + $0xb8] sm:$0xff]  ;;  %v223_v24 = vld [vmem:[%s969_s24 + $0xc0] sm:$0xf]  ;;  %v885_v26 = vld [vmem:[%s969_s24 + $0x50] sm:$0xff] }
  0x15   : > { %904 = vmatpush.bf16.msra.mxu1 %v899_v7  ;;  %905 = vmatpush.bf16.msra.mxu2 %v899_v7  ;;  %v329_v25 = vunpack.c.l.b16 %v223_v24  ;;  %v892_v27 = vld [vmem:[%s969_s24 + $0x88] sm:$0xff]  ;;  %v879_v28 = vld [vmem:[%s969_s24 + $0x20] sm:$0xff]  ;;  %v886_v30 = vld [vmem:[%s969_s24 + $0x58] sm:$0xff] }
  0x16   : > { %456 = vmatpush.bf16.msra.mxu0 %v899_v7  ;;  %906 = vmatpush.bf16.msra.mxu3 %v899_v7  ;;  %v893_v31 = vld [vmem:[%s969_s24 + $0x90] sm:$0xff]  ;;  %v880_v32 = vld [vmem:[%s969_s24 + $0x28] sm:$0xff]  ;;  %v887_v33 = vld [vmem:[%s969_s24 + $0x60] sm:$0xff] }
  0x17   : > { %v354_v29 = vpack.c.b16 %v329_v25, %v329_v25  ;;  %v894_v34 = vld [vmem:[%s969_s24 + $0x98] sm:$0xff] }
  0x18   : > { %854 = vmatmul.msk.bf16.vlgmr.msra.gmra.mxu1 %vm366_vm2, %v881_v8  ;;  %861 = vmatmul.msk.bf16.vlgmr.msra.gmra.mxu2 %vm366_vm2, %v888_v9 }
  0x19   : > { %848 = vmatmul.msk.bf16.vlgmr.msra.gmra.mxu0 %vm366_vm2, %v875_v10  ;;  %868 = vmatmul.msk.bf16.vlgmr.msra.gmra.mxu3 %vm366_vm2, %v895_v11 }
  0x28   : > { %855 = vmatmul.msk.bf16.gmra.mxu1 %vm366_vm2, %v882_v12  ;;  %862 = vmatmul.msk.bf16.gmra.mxu2 %vm366_vm2, %v889_v13 }
  0x29   : > { %849 = vmatmul.msk.bf16.gmra.mxu0 %vm366_vm2, %v876_v14  ;;  %869 = vmatmul.msk.bf16.gmra.mxu3 %vm366_vm2, %v896_v15 }
  0x38   : > { %856 = vmatmul.msk.bf16.gmra.mxu1 %vm366_vm2, %v883_v16  ;;  %863 = vmatmul.msk.bf16.gmra.mxu2 %vm366_vm2, %v890_v17 }
  0x39   : > { %850 = vmatmul.msk.bf16.gmra.mxu0 %vm366_vm2, %v877_v18  ;;  %870 = vmatmul.msk.bf16.gmra.mxu3 %vm366_vm2, %v897_v19 }
  0x48   : > { %857 = vmatmul.msk.bf16.gmra.mxu1 %vm366_vm2, %v884_v20  ;;  %864 = vmatmul.msk.bf16.gmra.mxu2 %vm366_vm2, %v891_v21 }
  0x49   : > { %851 = vmatmul.msk.bf16.gmra.mxu0 %vm366_vm2, %v878_v22  ;;  %871 = vmatmul.msk.bf16.gmra.mxu3 %vm366_vm2, %v898_v23 }
  0x58   : > { %858 = vmatmul.msk.bf16.gmra.mxu1 %vm366_vm2, %v885_v26  ;;  %865 = vmatmul.msk.bf16.gmra.mxu2 %vm366_vm2, %v892_v27 }
  0x59   : > { %852 = vmatmul.msk.bf16.gmra.mxu0 %vm366_vm2, %v879_v28  ;;  %872 = vmatmul.msk.bf16.gmra.mxu3 %vm366_vm2, %v354_v29 }
  0x68   : > { %859 = vmatmul.msk.bf16.gmra.mxu1 %vm366_vm2, %v886_v30  ;;  %866 = vmatmul.msk.bf16.gmra.mxu2 %vm366_vm2, %v893_v31 }
  0x69   : > { %853 = vmatmul.msk.bf16.gmra.mxu0 %vm366_vm2, %v880_v32 }
  0x78   : > { %860 = vmatmul.msk.bf16.gmra.mxu1 %vm366_vm2, %v887_v33  ;;  %867 = vmatmul.msk.bf16.gmra.mxu2 %vm366_vm2, %v894_v34 }
  0x95   : > { %v488_v36 = vpop.f32.mrf.mxu1 }
  0x96   : > { %v489_v37 = vadd.f32 %v1024_v35, %v488_v36  ;;  %v458_v38 = vpop.f32.mrf.mxu0 }
  0x97   : > { %v459_v39 = vadd.f32 %v1024_v35, %v458_v38 }
  0x98   : > { %v594_v40 = vmax.f32 %v489_v37, 0.0 }
  0x99   : > { %v582_v41 = vmax.f32 %v459_v39, 0.0 }
  0x9a   : > { %644 = vst.msk [vmem:[%s1031_s30 + $0x60] sm:$0xff] %vm631_vm3, %v594_v40 }
  0x9b   : > { %v523_v42 = vpop.f32.mrf.mxu2  ;;  %632 = vst.msk [vmem:[%s1031_s30] sm:$0xff] %vm631_vm3, %v582_v41 }
  0x9c   : > { %v524_v43 = vadd.f32 %v1024_v35, %v523_v42  ;;  %v558_v44 = vpop.f32.mrf.mxu3 }
  0x9d   : > { %v490_v45 = vpop.f32.mrf.mxu1  ;;  %v559_v46 = vadd.f32 %v1024_v35, %v558_v44 }
  0x9e   : > { %v608_v47 = vmax.f32 %v524_v43, 0.0  ;;  %v491_v48 = vadd.f32 %v1024_v35, %v490_v45  ;;  %v460_v49 = vpop.f32.mrf.mxu0 }
  0x9f   : > { %v461_v50 = vadd.f32 %v1024_v35, %v460_v49  ;;  %v622_v51 = vmax.f32 %v559_v46, 0.0 }
  0xa0   : > { %658 = vst.msk [vmem:[%s1031_s30 + $0xd0] sm:$0xff] %vm631_vm3, %v608_v47  ;;  %v595_v52 = vmax.f32 %v491_v48, 0.0 }
  0xa1   : > { %v583_v53 = vmax.f32 %v461_v50, 0.0  ;;  %672 = vst.msk [vmem:[%s1031_s30 + $0x140] sm:$0xff] %vm631_vm3, %v622_v51 }
  0xa2   : > { %645 = vst.msk [vmem:[%s1031_s30 + $0x68] sm:$0xff] %vm631_vm3, %v595_v52 }
  0xa3   : > { %v525_v54 = vpop.f32.mrf.mxu2  ;;  %633 = vst.msk [vmem:[%s1031_s30 + $0x8] sm:$0xff] %vm631_vm3, %v583_v53 }
  0xa4   : > { %v526_v55 = vadd.f32 %v1024_v35, %v525_v54  ;;  %v560_v56 = vpop.f32.mrf.mxu3 }
  0xa5   : > { %v493_v57 = vpop.f32.mrf.mxu1  ;;  %v561_v58 = vadd.f32 %v1024_v35, %v560_v56 }
  0xa6   : > { %v609_v59 = vmax.f32 %v526_v55, 0.0  ;;  %v494_v60 = vadd.f32 %v1024_v35, %v493_v57  ;;  %v463_v61 = vpop.f32.mrf.mxu0 }
  0xa7   : > { %v464_v62 = vadd.f32 %v1024_v35, %v463_v61  ;;  %v623_v63 = vmax.f32 %v561_v58, 0.0 }
  0xa8   : > { %659 = vst.msk [vmem:[%s1031_s30 + $0xd8] sm:$0xff] %vm631_vm3, %v609_v59  ;;  %v596_v0 = vmax.f32 %v494_v60, 0.0 }
  0xa9   : > { %v584_v1 = vmax.f32 %v464_v62, 0.0  ;;  %673 = vst.msk [vmem:[%s1031_s30 + $0x148] sm:$0xff] %vm631_vm3, %v623_v63 }
  0xaa   : > { %646 = vst.msk [vmem:[%s1031_s30 + $0x70] sm:$0xff] %vm631_vm3, %v596_v0 }
  0xab   : > { %v528_v2 = vpop.f32.mrf.mxu2  ;;  %634 = vst.msk [vmem:[%s1031_s30 + $0x10] sm:$0xff] %vm631_vm3, %v584_v1 }
  0xac   : > { %v529_v3 = vadd.f32 %v1024_v35, %v528_v2  ;;  %v563_v4 = vpop.f32.mrf.mxu3 }
  0xad   : > { %v495_v5 = vpop.f32.mrf.mxu1  ;;  %v564_v6 = vadd.f32 %v1024_v35, %v563_v4 }
  0xae   : > { %v610_v7 = vmax.f32 %v529_v3, 0.0  ;;  %v496_v8 = vadd.f32 %v1024_v35, %v495_v5  ;;  %v465_v9 = vpop.f32.mrf.mxu0 }
  0xaf   : > { %v466_v10 = vadd.f32 %v1024_v35, %v465_v9  ;;  %v624_v11 = vmax.f32 %v564_v6, 0.0 }
  0xb0   : > { %660 = vst.msk [vmem:[%s1031_s30 + $0xe0] sm:$0xff] %vm631_vm3, %v610_v7  ;;  %v597_v12 = vmax.f32 %v496_v8, 0.0 }
  0xb1   : > { %v585_v13 = vmax.f32 %v466_v10, 0.0  ;;  %674 = vst.msk [vmem:[%s1031_s30 + $0x150] sm:$0xff] %vm631_vm3, %v624_v11 }
  0xb2   : > { %647 = vst.msk [vmem:[%s1031_s30 + $0x78] sm:$0xff] %vm631_vm3, %v597_v12 }
  0xb3   : > { %v530_v14 = vpop.f32.mrf.mxu2  ;;  %635 = vst.msk [vmem:[%s1031_s30 + $0x18] sm:$0xff] %vm631_vm3, %v585_v13 }
  0xb4   : > { %v531_v15 = vadd.f32 %v1024_v35, %v530_v14  ;;  %v565_v16 = vpop.f32.mrf.mxu3 }
  0xb5   : > { %v498_v17 = vpop.f32.mrf.mxu1  ;;  %v566_v18 = vadd.f32 %v1024_v35, %v565_v16 }
  0xb6   : > { %v611_v19 = vmax.f32 %v531_v15, 0.0  ;;  %v499_v20 = vadd.f32 %v1024_v35, %v498_v17  ;;  %v468_v21 = vpop.f32.mrf.mxu0 }
  0xb7   : > { %v469_v22 = vadd.f32 %v1024_v35, %v468_v21  ;;  %v625_v23 = vmax.f32 %v566_v18, 0.0 }
  0xb8   : > { %661 = vst.msk [vmem:[%s1031_s30 + $0xe8] sm:$0xff] %vm631_vm3, %v611_v19  ;;  %v598_v24 = vmax.f32 %v499_v20, 0.0 }
  0xb9   : > { %v586_v25 = vmax.f32 %v469_v22, 0.0  ;;  %675 = vst.msk [vmem:[%s1031_s30 + $0x158] sm:$0xff] %vm631_vm3, %v625_v23 }
  0xba   : > { %648 = vst.msk [vmem:[%s1031_s30 + $0x80] sm:$0xff] %vm631_vm3, %v598_v24 }
  0xbb   : > { %v533_v26 = vpop.f32.mrf.mxu2  ;;  %636 = vst.msk [vmem:[%s1031_s30 + $0x20] sm:$0xff] %vm631_vm3, %v586_v25 }
  0xbc   : > { %v534_v27 = vadd.f32 %v1024_v35, %v533_v26  ;;  %v568_v28 = vpop.f32.mrf.mxu3 }
  0xbd   : > { %v500_v29 = vpop.f32.mrf.mxu1  ;;  %v569_v30 = vadd.f32 %v1024_v35, %v568_v28 }
  0xbe   : > { %v612_v31 = vmax.f32 %v534_v27, 0.0  ;;  %v501_v32 = vadd.f32 %v1024_v35, %v500_v29  ;;  %v470_v33 = vpop.f32.mrf.mxu0 }
  0xbf   : > { %v471_v34 = vadd.f32 %v1024_v35, %v470_v33  ;;  %v626_v36 = vmax.f32 %v569_v30, 0.0 }
  0xc0   : > { %662 = vst.msk [vmem:[%s1031_s30 + $0xf0] sm:$0xff] %vm631_vm3, %v612_v31  ;;  %v599_v37 = vmax.f32 %v501_v32, 0.0 }
  0xc1   : > { %v587_v38 = vmax.f32 %v471_v34, 0.0  ;;  %676 = vst.msk [vmem:[%s1031_s30 + $0x160] sm:$0xff] %vm631_vm3, %v626_v36 }
  0xc2   : > { %649 = vst.msk [vmem:[%s1031_s30 + $0x88] sm:$0xff] %vm631_vm3, %v599_v37 }
  0xc3   : > { %v535_v39 = vpop.f32.mrf.mxu2  ;;  %637 = vst.msk [vmem:[%s1031_s30 + $0x28] sm:$0xff] %vm631_vm3, %v587_v38 }
  0xc4   : > { %v536_v40 = vadd.f32 %v1024_v35, %v535_v39  ;;  %v570_v41 = vpop.f32.mrf.mxu3 }
  0xc5   : > { %v503_v42 = vpop.f32.mrf.mxu1  ;;  %v571_v43 = vadd.f32 %v1024_v35, %v570_v41 }
  0xc6   : > { %v613_v44 = vmax.f32 %v536_v40, 0.0  ;;  %v504_v45 = vadd.f32 %v1024_v35, %v503_v42  ;;  %v473_v46 = vpop.f32.mrf.mxu0 }
  0xc7   : > { %v474_v47 = vadd.f32 %v1024_v35, %v473_v46  ;;  %v627_v48 = vmax.f32 %v571_v43, 0.0 }
  0xc8   : > { %663 = vst.msk [vmem:[%s1031_s30 + $0xf8] sm:$0xff] %vm631_vm3, %v613_v44  ;;  %v600_v49 = vmax.f32 %v504_v45, 0.0 }
  0xc9   : > { %v588_v50 = vmax.f32 %v474_v47, 0.0  ;;  %677 = vst.msk [vmem:[%s1031_s30 + $0x168] sm:$0xff] %vm631_vm3, %v627_v48 }
  0xca   : > { %650 = vst.msk [vmem:[%s1031_s30 + $0x90] sm:$0xff] %vm631_vm3, %v600_v49 }
  0xcb   : > { %v538_v51 = vpop.f32.mrf.mxu2  ;;  %638 = vst.msk [vmem:[%s1031_s30 + $0x30] sm:$0xff] %vm631_vm3, %v588_v50 }
  0xcc   : > { %v539_v52 = vadd.f32 %v1024_v35, %v538_v51  ;;  %v573_v53 = vpop.f32.mrf.mxu3 }
  0xcd   : > { %v505_v54 = vpop.f32.mrf.mxu1  ;;  %v574_v55 = vadd.f32 %v1024_v35, %v573_v53 }
  0xce   : > { %v614_v56 = vmax.f32 %v539_v52, 0.0  ;;  %v506_v57 = vadd.f32 %v1024_v35, %v505_v54  ;;  %v475_v58 = vpop.f32.mrf.mxu0 }
  0xcf   : > { %v476_v59 = vadd.f32 %v1024_v35, %v475_v58  ;;  %v628_v60 = vmax.f32 %v574_v55, 0.0 }
  0xd0   : > { %664 = vst.msk [vmem:[%s1031_s30 + $0x100] sm:$0xff] %vm631_vm3, %v614_v56  ;;  %v601_v61 = vmax.f32 %v506_v57, 0.0 }
  0xd1   : > { %v589_v62 = vmax.f32 %v476_v59, 0.0  ;;  %678 = vst.msk [vmem:[%s1031_s30 + $0x170] sm:$0xff] %vm631_vm3, %v628_v60 }
  0xd2   : > { %651 = vst.msk [vmem:[%s1031_s30 + $0x98] sm:$0xff] %vm631_vm3, %v601_v61 }
  0xd3   : > { %v540_v63 = vpop.f32.mrf.mxu2  ;;  %639 = vst.msk [vmem:[%s1031_s30 + $0x38] sm:$0xff] %vm631_vm3, %v589_v62 }
  0xd4   : > { %v541_v0 = vadd.f32 %v1024_v35, %v540_v63  ;;  %v575_v1 = vpop.f32.mrf.mxu3 }
  0xd5   : > { %v508_v2 = vpop.f32.mrf.mxu1  ;;  %v576_v3 = vadd.f32 %v1024_v35, %v575_v1 }
  0xd6   : > { %v615_v4 = vmax.f32 %v541_v0, 0.0  ;;  %v509_v5 = vadd.f32 %v1024_v35, %v508_v2  ;;  %v478_v6 = vpop.f32.mrf.mxu0 }
  0xd7   : > { %v479_v7 = vadd.f32 %v1024_v35, %v478_v6  ;;  %v629_v8 = vmax.f32 %v576_v3, 0.0 }
  0xd8   : > { %665 = vst.msk [vmem:[%s1031_s30 + $0x108] sm:$0xff] %vm631_vm3, %v615_v4  ;;  %v602_v9 = vmax.f32 %v509_v5, 0.0 }
  0xd9   : > { %v590_v10 = vmax.f32 %v479_v7, 0.0  ;;  %679 = vst.msk [vmem:[%s1031_s30 + $0x178] sm:$0xff] %vm631_vm3, %v629_v8 }
  0xda   : > { %652 = vst.msk [vmem:[%s1031_s30 + $0xa0] sm:$0xff] %vm631_vm3, %v602_v9 }
  0xdb   : > { %v543_v11 = vpop.f32.mrf.mxu2  ;;  %640 = vst.msk [vmem:[%s1031_s30 + $0x40] sm:$0xff] %vm631_vm3, %v590_v10 }
  0xdc   : > { %v544_v12 = vadd.f32 %v1024_v35, %v543_v11  ;;  %v578_v13 = vpop.f32.mrf.mxu3 }
  0xdd   : > { %v510_v14 = vpop.f32.mrf.mxu1  ;;  %v579_v15 = vadd.f32 %v1024_v35, %v578_v13 }
  0xde   : > { %v616_v16 = vmax.f32 %v544_v12, 0.0  ;;  %v511_v17 = vadd.f32 %v1024_v35, %v510_v14  ;;  %v480_v18 = vpop.f32.mrf.mxu0 }
  0xdf   : > { %v481_v19 = vadd.f32 %v1024_v35, %v480_v18  ;;  %v630_v20 = vmax.f32 %v579_v15, 0.0 }
  0xe0   : > { %666 = vst.msk [vmem:[%s1031_s30 + $0x110] sm:$0xff] %vm631_vm3, %v616_v16  ;;  %v603_v21 = vmax.f32 %v511_v17, 0.0 }
  0xe1   : > { %v591_v22 = vmax.f32 %v481_v19, 0.0  ;;  %680 = vst.msk [vmem:[%s1031_s30 + $0x180] sm:$0xff] %vm631_vm3, %v630_v20 }
  0xe2   : > { %653 = vst.msk [vmem:[%s1031_s30 + $0xa8] sm:$0xff] %vm631_vm3, %v603_v21 }
  0xe3   : > { %v545_v23 = vpop.f32.mrf.mxu2  ;;  %641 = vst.msk [vmem:[%s1031_s30 + $0x48] sm:$0xff] %vm631_vm3, %v591_v22 }
  0xe4   : > { %v546_v24 = vadd.f32 %v1024_v35, %v545_v23  ;;  %v580_v25 = vpop.f32.mrf.mxu3 }
  0xe5   : > { %v513_v26 = vpop.f32.mrf.mxu1 }
  0xe6   : > { %v617_v27 = vmax.f32 %v546_v24, 0.0  ;;  %v514_v28 = vadd.f32 %v1024_v35, %v513_v26  ;;  %v483_v29 = vpop.f32.mrf.mxu0 }
  0xe7   : > { %v484_v30 = vadd.f32 %v1024_v35, %v483_v29 }
  0xe8   : > { %667 = vst.msk [vmem:[%s1031_s30 + $0x118] sm:$0xff] %vm631_vm3, %v617_v27  ;;  %v604_v31 = vmax.f32 %v514_v28, 0.0 }
  0xe9   : > { %v592_v32 = vmax.f32 %v484_v30, 0.0 }
  0xea   : > { %654 = vst.msk [vmem:[%s1031_s30 + $0xb0] sm:$0xff] %vm631_vm3, %v604_v31 }
  0xeb   : > { %v548_v33 = vpop.f32.mrf.mxu2  ;;  %642 = vst.msk [vmem:[%s1031_s30 + $0x50] sm:$0xff] %vm631_vm3, %v592_v32 }
  0xec   : > { %v549_v34 = vadd.f32 %v1024_v35, %v548_v33 }
  0xed   : > { %v515_v36 = vpop.f32.mrf.mxu1 }
  0xee   : > { %v618_v37 = vmax.f32 %v549_v34, 0.0  ;;  %v516_v38 = vadd.f32 %v1024_v35, %v515_v36  ;;  %v485_v39 = vpop.f32.mrf.mxu0 }
  0xef   : > { %v486_v40 = vadd.f32 %v1024_v35, %v485_v39 }
  0xf0   : > { %668 = vst.msk [vmem:[%s1031_s30 + $0x120] sm:$0xff] %vm631_vm3, %v618_v37  ;;  %v605_v41 = vmax.f32 %v516_v38, 0.0 }
  0xf1   : > { %v593_v42 = vmax.f32 %v486_v40, 0.0 }
  0xf2   : > { %655 = vst.msk [vmem:[%s1031_s30 + $0xb8] sm:$0xff] %vm631_vm3, %v605_v41 }
  0xf3   : > { %v550_v43 = vpop.f32.mrf.mxu2  ;;  %643 = vst.msk [vmem:[%s1031_s30 + $0x58] sm:$0xff] %vm631_vm3, %v593_v42 }
  0xf4   : > { %v551_v44 = vadd.f32 %v1024_v35, %v550_v43 }
  0xf5   : > { %v518_v45 = vpop.f32.mrf.mxu1 }
  0xf6   : > { %v619_v46 = vmax.f32 %v551_v44, 0.0  ;;  %v519_v47 = vadd.f32 %v1024_v35, %v518_v45 }
  0xf8   : > { %669 = vst.msk [vmem:[%s1031_s30 + $0x128] sm:$0xff] %vm631_vm3, %v619_v46  ;;  %v606_v48 = vmax.f32 %v519_v47, 0.0 }
  0xfa   : > { %656 = vst.msk [vmem:[%s1031_s30 + $0xc0] sm:$0xff] %vm631_vm3, %v606_v48 }
  0xfb   : > { %v553_v49 = vpop.f32.mrf.mxu2 }
  0xfc   : > { %v554_v50 = vadd.f32 %v1024_v35, %v553_v49 }
  0xfd   : > { %v520_v51 = vpop.f32.mrf.mxu1 }
  0xfe   : > { %v620_v52 = vmax.f32 %v554_v50, 0.0  ;;  %v521_v53 = vadd.f32 %v1024_v35, %v520_v51 }
 0x100   : > { %670 = vst.msk [vmem:[%s1031_s30 + $0x130] sm:$0xff] %vm631_vm3, %v620_v52  ;;  %v607_v54 = vmax.f32 %v521_v53, 0.0 }
 0x102   : > { %657 = vst.msk [vmem:[%s1031_s30 + $0xc8] sm:$0xff] %vm631_vm3, %v607_v54 }
 0x103   : > { %v555_v55 = vpop.f32.mrf.mxu2 }
 0x104   : > { %v556_v56 = vadd.f32 %v1024_v35, %v555_v55 }
 0x106   : > { %v621_v57 = vmax.f32 %v556_v56, 0.0 }
 0x108   : > { %671 = vst.msk [vmem:[%s1031_s30 + $0x138] sm:$0xff] %vm631_vm3, %v621_v57 }
 0x109 PF: > { %s13_s12 = sadd.s32 1, %s923_s12  }
 0x10a   : > { %p10_p4 = scmp.ge.s32.totalorder %s13_s12, 6  }
 0x10c   :  { %12 = sbr.rel (!%p10_p4) target bundleno = 1 (0x1), region = 62 }

</bundles_post_ra>
